<compile_context>
chip_gen: v5e
topology: v5e:2x2
jax: 0.10.0
libtpu: 0.0.40
codegen_flags: <defaults>
</compile_context>

<pallas_src>
import functools

import jax
import jax.numpy as jnp
from jax.experimental import pallas as pl
from jax.experimental.pallas import tpu as pltpu


def attention_readout_kernel(x_ref, w_ref, labels_ref, out_ref,
                             m_sc, l_sc, acc_sc):
    # x_ref:      (bn, D)  float32  (one atom-block of one molecule)
    # w_ref:      (D, 1)   float32  (nn.Linear(in_dim, 1).weight, transposed)
    # labels_ref: (bn, 1)  int32
    # out_ref:    (S, D)   float32
    # m_sc/l_sc:  (1, 1)   float32  running max / running denom (online softmax)
    # acc_sc:     (S, D)   float32  running un-normalized segment sums
    n = pl.program_id(1)

    @pl.when(n == 0)
    def _init():
        m_sc[...] = jnp.full((1, 1), -jnp.inf, jnp.float32)
        l_sc[...] = jnp.zeros((1, 1), jnp.float32)
        acc_sc[...] = jnp.zeros(acc_sc.shape, jnp.float32)

    x = x_ref[...]                                                  # (bn, D)
    labels = labels_ref[...]                                        # (bn, 1)

    # Linear(in_dim, 1) logits for this atom block (bias is a softmax no-op).
    logits = jnp.dot(x, w_ref[...],
                     preferred_element_type=jnp.float32)            # (bn, 1)

    # Online softmax over the atom (N) axis, streamed block by block.
    m_prev = m_sc[...]                                              # (1, 1)
    m_new = jnp.maximum(m_prev, jnp.max(logits, axis=0, keepdims=True))
    alpha = jnp.exp(m_prev - m_new)                                 # (1, 1)
    p = jnp.exp(logits - m_new)                                     # (bn, 1)

    l_sc[...] = alpha * l_sc[...] + jnp.sum(p, axis=0, keepdims=True)
    m_sc[...] = m_new

    # Fold the (un-normalized) attention weights into the one-hot:
    # scaled[n, s] = [labels[n] == s] * p[n]   (bn*S VPU work, no (bn,D) temp)
    bn = x_ref.shape[0]
    S = acc_sc.shape[0]
    seg_ids = jax.lax.broadcasted_iota(jnp.int32, (bn, S), 1)       # (bn, S)
    scaled_onehot = jnp.where(seg_ids == labels, p, 0.0)            # (bn, S)

    # Contract over the atom axis on the MXU: (bn,S)^T @ (bn,D) -> (S, D)
    part = jax.lax.dot_general(
        scaled_onehot, x,
        dimension_numbers=(((0,), (0,)), ((), ())),
        preferred_element_type=jnp.float32)                         # (S, D)
    acc_sc[...] = alpha * acc_sc[...] + part

    @pl.when(n == pl.num_programs(1) - 1)
    def _finalize():
        out_ref[...] = (acc_sc[...] / l_sc[...]).astype(out_ref.dtype)


@functools.partial(jax.jit, static_argnames=("num_segments", "block_n"))
def attention_readout_atom(x, labels, w, b=None, *, num_segments, block_n=None):
    """AttentionReadoutAtom forward.

    x:      (B, N, D) or (N, D) float
    labels: (B, N)    or (N,)   int   monomer ids in [0, num_segments)
    w:      (D, 1)              float nn.Linear(in_dim, 1) weight (transposed)
    b:      ignored — softmax over atoms is shift-invariant, so the Linear bias
            cannot affect the output.
    Returns (B, num_segments, D) (or (num_segments, D) for 2-D input).
    """
    del b  # mathematically a no-op on the output
    squeeze = (x.ndim == 2)
    if squeeze:
        x = x[None]
        labels = labels[None]

    B, N, D = x.shape
    S = num_segments
    if block_n is None:
        block_n = N
    assert N % block_n == 0, "N must be divisible by block_n (pad atoms if not)"
    assert block_n == N or block_n % 8 == 0, "block_n must be a multiple of 8"
    nb = N // block_n

    x = x.astype(jnp.float32)
    w = w.astype(jnp.float32)
    labels3 = labels.reshape(B, N, 1).astype(jnp.int32)

    grid_spec = pltpu.PrefetchScalarGridSpec(
        num_scalar_prefetch=0,
        grid=(B, nb),                                   # reduction (atoms) last
        in_specs=[
            pl.BlockSpec((None, block_n, D), lambda bi, ni: (bi, ni, 0)),  # x
            pl.BlockSpec((D, 1), lambda bi, ni: (0, 0)),                   # w
            pl.BlockSpec((None, block_n, 1), lambda bi, ni: (bi, ni, 0)),  # labels
        ],
        out_specs=pl.BlockSpec((None, S, D), lambda bi, ni: (bi, 0, 0)),
        scratch_shapes=[
            pltpu.VMEM((1, 1), jnp.float32),   # running max m
            pltpu.VMEM((1, 1), jnp.float32),   # running denom l
            pltpu.VMEM((S, D), jnp.float32),   # running segment-sum accumulator
        ],
    )

    out = pl.pallas_call(
        attention_readout_kernel,
        out_shape=jax.ShapeDtypeStruct((B, S, D), jnp.float32),
        grid_spec=grid_spec,
        compiler_params=pltpu.CompilerParams(
            dimension_semantics=("parallel", "arbitrary")),
    )(x, w, labels3)

    return out[0] if squeeze else out
    # TODO(synk): optional bf16 x / one-hot (f32 accumulation) to halve HBM
    # traffic on v6e/v5e once the 1e-5-vs-f32 tolerance is relaxed.


def reference_one(x, labels, w, b, num_segments):
    # Includes the Linear bias — the kernel drops it (softmax shift-invariance),
    # so agreement here also validates that simplification.
    logits = x @ w + b.reshape(1, 1)                  # (N, 1)
    attn = jax.nn.softmax(logits, axis=0)             # softmax over atoms
    return jax.ops.segment_sum(x * attn, labels, num_segments=num_segments)


if __name__ == "__main__":
    key = jax.random.PRNGKey(0)
    k_x, k_w, k_b = jax.random.split(key, 3)

    # B molecules, N atoms each, D features, S monomers per molecule.
    B, N, D, S = 4, 32, 128, 4
    x = jax.random.normal(k_x, (B, N, D), dtype=jnp.float32)
    labels = (jnp.arange(N, dtype=jnp.int32)[None, :]
              + jnp.arange(B, dtype=jnp.int32)[:, None]) % S          # (B, N)

    # Deterministic synthetic nn.Linear(in_dim, 1) params.
    w = jax.random.normal(k_w, (D, 1), dtype=jnp.float32) / jnp.sqrt(D)
    b = jax.random.normal(k_b, (1,), dtype=jnp.float32) * 0.1

    # block_n=16 -> 2 atom blocks per molecule: exercises the online-softmax path.
    out = attention_readout_atom(x, labels, w, b, num_segments=S, block_n=16)
    out = jax.block_until_ready(out)

    ref = jax.vmap(lambda xb, lb: reference_one(xb, lb, w, b, S))(x, labels)
    assert out.shape == (B, S, D), out.shape
    err = jnp.max(jnp.abs(out - ref))
    assert jnp.allclose(out, ref, atol=1e-5, rtol=1e-5), f"max abs err {err}"

    # Single-molecule (2-D input) path, matching the original module signature.
    out1 = attention_readout_atom(x[0], labels[0], w, b, num_segments=S)
    out1 = jax.block_until_ready(out1)
    assert out1.shape == (S, D)
    assert jnp.allclose(out1, ref[0], atol=1e-5, rtol=1e-5)

    print("KERNEL_OK")
</pallas_src>

<mosaic_0001>
module attributes {stable_mosaic.version = 11 : i64} {
  func.func @attention_readout_kernel(%arg0: i32, %arg1: i32, %arg2: memref<1x16x128xf32, #tpu.memory_space<vmem>>, %arg3: memref<128x1xf32, #tpu.memory_space<vmem>>, %arg4: memref<1x16x1xi32, #tpu.memory_space<vmem>>, %arg5: memref<1x4x128xf32, #tpu.memory_space<vmem>>, %arg6: memref<1x1xf32, #tpu.memory_space<vmem>>, %arg7: memref<1x1xf32, #tpu.memory_space<vmem>>, %arg8: memref<4x128xf32, #tpu.memory_space<vmem>>) attributes {dimension_semantics = [#tpu.dimension_semantics<parallel>, #tpu.dimension_semantics<arbitrary>], iteration_bounds = array<i64: 4, 2>, scalar_prefetch = 0 : i64, scratch_operands = 3 : i64, tpu.core_type = #tpu.core_type<tc>, window_params = [{transform_indices = @transform_0, window_bounds = array<i64: 1, 16, 128>}, {pipeline_mode = #tpu.pipeline_mode<synchronous>, transform_indices = @transform_1, window_bounds = array<i64: 128, 1>}, {transform_indices = @transform_2, window_bounds = array<i64: 1, 16, 1>}, {transform_indices = @transform_3, window_bounds = array<i64: 1, 4, 128>}]} {
    %c0_i32 = arith.constant 0 : i32
    %0 = arith.cmpi eq, %arg1, %c0_i32 : i32
    %1 = arith.extui %0 : i1 to i32
    %c0_i32_0 = arith.constant 0 : i32
    %2 = arith.cmpi ne, %1, %c0_i32_0 : i32
    scf.if %2 {
      %cst_25 = arith.constant 0xFF800000 : f32
      %41 = vector.broadcast %cst_25 : f32 to vector<1x1xf32>
      %c0_26 = arith.constant 0 : index
      %c0_27 = arith.constant 0 : index
      %42 = vector.load %arg6[%c0_26, %c0_27] : memref<1x1xf32, #tpu.memory_space<vmem>>, vector<1x1xf32>
      tpu.vector_store %arg6[%c0_26, %c0_27], %41 {strides = array<i32>} : memref<1x1xf32, #tpu.memory_space<vmem>>, vector<1x1xf32>,
      %cst_28 = arith.constant 0.000000e+00 : f32
      %43 = vector.broadcast %cst_28 : f32 to vector<1x1xf32>
      %c0_29 = arith.constant 0 : index
      %c0_30 = arith.constant 0 : index
      %44 = vector.load %arg7[%c0_29, %c0_30] : memref<1x1xf32, #tpu.memory_space<vmem>>, vector<1x1xf32>
      tpu.vector_store %arg7[%c0_29, %c0_30], %43 {strides = array<i32>} : memref<1x1xf32, #tpu.memory_space<vmem>>, vector<1x1xf32>,
      %cst_31 = arith.constant 0.000000e+00 : f32
      %45 = vector.broadcast %cst_31 : f32 to vector<4x128xf32>
      %c0_32 = arith.constant 0 : index
      %c0_33 = arith.constant 0 : index
      %46 = vector.load %arg8[%c0_32, %c0_33] : memref<4x128xf32, #tpu.memory_space<vmem>>, vector<4x128xf32>
      tpu.vector_store %arg8[%c0_32, %c0_33], %45 {strides = array<i32>} : memref<4x128xf32, #tpu.memory_space<vmem>>, vector<4x128xf32>,
    } else {
    }
    %c0 = arith.constant 0 : index
    %c0_1 = arith.constant 0 : index
    %c0_2 = arith.constant 0 : index
    %3 = vector.load %arg2[%c0, %c0_1, %c0_2] : memref<1x16x128xf32, #tpu.memory_space<vmem>>, vector<1x16x128xf32>
    %4 = vector.shape_cast %3 : vector<1x16x128xf32> to vector<16x128xf32>
    %c0_3 = arith.constant 0 : index
    %c0_4 = arith.constant 0 : index
    %c0_5 = arith.constant 0 : index
    %5 = vector.load %arg4[%c0_3, %c0_4, %c0_5] : memref<1x16x1xi32, #tpu.memory_space<vmem>>, vector<1x16x1xi32>
    %6 = vector.shape_cast %5 : vector<1x16x1xi32> to vector<16x1xi32>
    %c0_6 = arith.constant 0 : index
    %c0_7 = arith.constant 0 : index
    %7 = vector.load %arg3[%c0_6, %c0_7] : memref<128x1xf32, #tpu.memory_space<vmem>>, vector<128x1xf32>
    %cst = arith.constant dense<0.000000e+00> : vector<16x1xf32>
    %8 = tpu.matmul %4, %7, %cst {dimension_numbers = #tpu.dot_dimension_numbers<[1], [0], [0], [1], [0, 0, 1, 1], [], []>} : vector<16x128xf32>, vector<128x1xf32>, vector<16x1xf32> -> vector<16x1xf32>
    %c0_8 = arith.constant 0 : index
    %c0_9 = arith.constant 0 : index
    %9 = vector.load %arg6[%c0_8, %c0_9] : memref<1x1xf32, #tpu.memory_space<vmem>>, vector<1x1xf32>
    %cst_10 = arith.constant dense<0xFF800000> : vector<1xf32>
    %10 = vector.multi_reduction <maximumf>, %8, %cst_10 [0] : vector<16x1xf32> to vector<1xf32>
    %11 = vector.shape_cast %10 : vector<1xf32> to vector<1x1xf32>
    %12 = arith.maximumf %9, %11 : vector<1x1xf32>
    %13 = arith.subf %9, %12 : vector<1x1xf32>
    %14 = math.exp %13 : vector<1x1xf32>
    %15 = vector.broadcast %12 : vector<1x1xf32> to vector<16x1xf32>
    %16 = arith.subf %8, %15 : vector<16x1xf32>
    %17 = math.exp %16 : vector<16x1xf32>
    %c0_11 = arith.constant 0 : index
    %c0_12 = arith.constant 0 : index
    %18 = vector.load %arg7[%c0_11, %c0_12] : memref<1x1xf32, #tpu.memory_space<vmem>>, vector<1x1xf32>
    %19 = arith.mulf %14, %18 : vector<1x1xf32>
    %cst_13 = arith.constant dense<0.000000e+00> : vector<1xf32>
    %20 = vector.multi_reduction <add>, %17, %cst_13 [0] : vector<16x1xf32> to vector<1xf32>
    %21 = vector.shape_cast %20 : vector<1xf32> to vector<1x1xf32>
    %22 = arith.addf %19, %21 : vector<1x1xf32>
    %c0_14 = arith.constant 0 : index
    %c0_15 = arith.constant 0 : index
    %23 = vector.load %arg7[%c0_14, %c0_15] : memref<1x1xf32, #tpu.memory_space<vmem>>, vector<1x1xf32>
    tpu.vector_store %arg7[%c0_14, %c0_15], %22 {strides = array<i32>} : memref<1x1xf32, #tpu.memory_space<vmem>>, vector<1x1xf32>,
    %c0_16 = arith.constant 0 : index
    %c0_17 = arith.constant 0 : index
    %24 = vector.load %arg6[%c0_16, %c0_17] : memref<1x1xf32, #tpu.memory_space<vmem>>, vector<1x1xf32>
    tpu.vector_store %arg6[%c0_16, %c0_17], %12 {strides = array<i32>} : memref<1x1xf32, #tpu.memory_space<vmem>>, vector<1x1xf32>,
    %25 = tpu.iota {dimensions = array<i32: 1>} : vector<16x4xi32>
    %26 = vector.broadcast %6 : vector<16x1xi32> to vector<16x4xi32>
    %27 = arith.cmpi eq, %25, %26 : vector<16x4xi32>
    %cst_18 = arith.constant 0.000000e+00 : f32
    %28 = vector.shape_cast %17 : vector<16x1xf32> to vector<16x1xf32>
    %29 = vector.broadcast %28 : vector<16x1xf32> to vector<16x4xf32>
    %30 = vector.broadcast %cst_18 : f32 to vector<16x4xf32>
    %31 = arith.select %27, %29, %30 : vector<16x4xi1>, vector<16x4xf32>
    %cst_19 = arith.constant dense<0.000000e+00> : vector<4x128xf32>
    %32 = tpu.matmul %31, %4, %cst_19 {dimension_numbers = #tpu.dot_dimension_numbers<[0], [0], [1], [1], [0, 1, 1, 1], [], []>} : vector<16x4xf32>, vector<16x128xf32>, vector<4x128xf32> -> vector<4x128xf32>
    %c0_20 = arith.constant 0 : index
    %c0_21 = arith.constant 0 : index
    %33 = vector.load %arg8[%c0_20, %c0_21] : memref<4x128xf32, #tpu.memory_space<vmem>>, vector<4x128xf32>
    %34 = vector.broadcast %14 : vector<1x1xf32> to vector<4x128xf32>
    %35 = arith.mulf %34, %33 : vector<4x128xf32>
    %36 = arith.addf %35, %32 : vector<4x128xf32>
    %c0_22 = arith.constant 0 : index
    %c0_23 = arith.constant 0 : index
    %37 = vector.load %arg8[%c0_22, %c0_23] : memref<4x128xf32, #tpu.memory_space<vmem>>, vector<4x128xf32>
    tpu.vector_store %arg8[%c0_22, %c0_23], %36 {strides = array<i32>} : memref<4x128xf32, #tpu.memory_space<vmem>>, vector<4x128xf32>,
    %c1_i32 = arith.constant 1 : i32
    %38 = arith.cmpi eq, %arg1, %c1_i32 : i32
    %39 = arith.extui %38 : i1 to i32
    %c0_i32_24 = arith.constant 0 : i32
    %40 = arith.cmpi ne, %39, %c0_i32_24 : i32
    scf.if %40 {
      %c0_25 = arith.constant 0 : index
      %c0_26 = arith.constant 0 : index
      %41 = vector.load %arg8[%c0_25, %c0_26] : memref<4x128xf32, #tpu.memory_space<vmem>>, vector<4x128xf32>
      %c0_27 = arith.constant 0 : index
      %c0_28 = arith.constant 0 : index
      %42 = vector.load %arg7[%c0_27, %c0_28] : memref<1x1xf32, #tpu.memory_space<vmem>>, vector<1x1xf32>
      %43 = vector.broadcast %42 : vector<1x1xf32> to vector<4x128xf32>
      %44 = arith.divf %41, %43 : vector<4x128xf32>
      %c0_29 = arith.constant 0 : index
      %c0_30 = arith.constant 0 : index
      %c0_31 = arith.constant 0 : index
      %45 = vector.load %arg5[%c0_29, %c0_30, %c0_31] : memref<1x4x128xf32, #tpu.memory_space<vmem>>, vector<1x4x128xf32>
      %46 = vector.shape_cast %45 : vector<1x4x128xf32> to vector<4x128xf32>
      %47 = vector.shape_cast %44 : vector<4x128xf32> to vector<1x4x128xf32>
      tpu.vector_store %arg5[%c0_29, %c0_30, %c0_31], %47 {strides = array<i32>} : memref<1x4x128xf32, #tpu.memory_space<vmem>>, vector<1x4x128xf32>,
    } else {
    }
    return
  }
  func.func @transform_0(%arg0: i32, %arg1: i32) -> (i32, i32, i32) {
    %c0_i32 = arith.constant 0 : i32
    %c0_i32_0 = arith.constant 0 : i32
    return %arg0, %arg1, %c0_i32 : i32, i32, i32
  }
  func.func @transform_1(%arg0: i32, %arg1: i32) -> (i32, i32) {
    %c0_i32 = arith.constant 0 : i32
    %c0_i32_0 = arith.constant 0 : i32
    %c0_i32_1 = arith.constant 0 : i32
    return %c0_i32, %c0_i32_0 : i32, i32
  }
  func.func @transform_2(%arg0: i32, %arg1: i32) -> (i32, i32, i32) {
    %c0_i32 = arith.constant 0 : i32
    %c0_i32_0 = arith.constant 0 : i32
    return %arg0, %arg1, %c0_i32 : i32, i32, i32
  }
  func.func @transform_3(%arg0: i32, %arg1: i32) -> (i32, i32, i32) {
    %c0_i32 = arith.constant 0 : i32
    %c0_i32_0 = arith.constant 0 : i32
    %c0_i32_1 = arith.constant 0 : i32
    return %arg0, %c0_i32, %c0_i32_0 : i32, i32, i32
  }
}

</mosaic_0001>

<bundles_post_ra>
// kernel: attention_readout_atom.1
= control target key start
LH: loop header
LB: loop body
LE: loop exit
PB: predicated region body
PF: predicated region fallthrough
CT: control target
= control target key end

     0   :  { %8 = vsyncpa [#allocation6], 0  ;;  %s984_s0 = inlined_call_operand.vmem [shape: f32[4,32,128], index: 0, kind: input, shape index: {}]   ;;  %s985_s1 = inlined_call_operand.vmem [shape: f32[128,1], index: 1, kind: input, shape index: {}]   ;;  %s986_s2 = inlined_call_operand.vmem [shape: s32[4,32,1], index: 2, kind: input, shape index: {}]   ;;  %s987_s3 = inlined_call_operand.hbm [shape: f32[4,4,128], index: 3, kind: output, shape index: {}]  }
   0x1   :  { %10 = vsyncpa [#allocation6 + $0x1], 0  ;;  %s792_s12 = smov 0   ;;  %s794_s13 = smov 0  }
   0x2   :  { %s796_s14 = smov 0   ;;  %s798_s15 = smov 0  }
   0x3   :  { %s800_s16 = smov 0   ;;  %s802_s17 = smov 0  }
   0x4   :  { %s804_s18 = smov 0   ;;  %s806_s19 = smov 0  }
   0x5 LB: > { %s549_s20 = sadd.s32 4294967295, %s766_s19   ;;  %s550_s21 = sadd.s32 4294967294, %s766_s19   ;;  %s766_s19 = sphi %s806_s19, %s16_s19   ;;  %s762_s18 = sphi %s804_s18, %s996_s18   ;;  %s758_s17 = sphi %s802_s17, %s995_s17   ;;  %s754_s16 = sphi %s800_s16, %s994_s16   ;;  %s750_s15 = sphi %s798_s15, %s993_s15   ;;  %s746_s14 = sphi %s796_s14, %s992_s14   ;;  %s742_s13 = sphi %s794_s13, %s991_s13   ;;  %s738_s12 = sphi %s792_s12, %s990_s12  }
   0x6   : > { %s25_s22 = sadd.s32 1, %s758_s17  ;;  %s28_s23 = sadd.s32 1, %s762_s18 }
   0x7   : > { %p26_p0 = scmp.ge.s32.totalorder %s25_s22, 2  ;;  %p122_p1 = scmp.ne.s32.totalorder %s746_s14, %s742_s13 }
   0x8   : > { %p123_p2 = scmp.eq.s32.totalorder %s549_s20, 7  ;;  %p128_p4 = scmp.ne.s32.totalorder %s742_s13, %s738_s12 }
   0x9   : > { %s998_s22 = smov (%p26_p0, %s25_s22), 0  ;;  %s1000_s23 = smov (!%p26_p0, %s28_s23), %s762_s18 }
   0xa   : > { %p841_p3 = por %p123_p2, %p122_p1  ;;  %p30_p5 = scmp.ge.s32.totalorder %s1000_s23, 4 }
   0xb   : > { %p129_p6 = scmp.eq.s32.totalorder %s550_s21, 7  ;;  %p553_p7 = scmp.ge.s32.totalorder %s766_s19, 1 }
   0xc   : > { %p176_p8 = scmp.lt.s32.totalorder %s766_s19, 9  ;;  %s1002_s23 = smov (%p30_p5, %s1000_s23), 0 }
   0xd   : > { %p851_p9 = por %p129_p6, %p128_p4  ;;  %s109_s26 = ssub.s32 %s762_s18, %s1002_s23 }
   0xe   : > { %p177_p10 = pnand %p553_p7, %p176_p8  ;;  %s112_s27 = sadd.s32 1, %s746_s14 }
   0xf   : > { %p110_p11 = scmp.eq.s32.totalorder %s109_s26, 0  ;;  %s210_s29 = sand.u32 (!%p177_p10), 1, %s742_s13  }
  0x10   : > { %180 = sbr.rel (%p177_p10) target bundleno = 776 (0x308), region = 32  ;;  %s555_s30 = sshll.u32 (!%p177_p10), %s750_s15, 1 }
  0x11   : > { %s859_s28 = scalar_select %p110_p11, %s746_s14, %s112_s27  }
  0x12   : > { %s865_s4 = sshll.u32 (!%p177_p10), %s210_s29, 2  ;;  %p214_p12 = scmp.lt.s32.totalorder (!%p177_p10), %s754_s16, 3 }
  0x13   : > { %p216_p13 = scmp.lt.s32.totalorder (!%p177_p10), %s555_s30, 3  ;;  %s212_s27 = scalar_lea.vmem (!%p177_p10), [#allocation5], %s865_s4 }
  0x14   : > { %p561_p0 = scmp.ne.s32.totalorder (!%p177_p10), %s750_s15, 0 }
  0x15   : > { %s215_s5 = scalar_select %p214_p12, %s754_s16, 3 }
  0x16   : > { %s1004_s30 = smov (!%p216_p13, %s555_s30), 3  ;;  %236 = sbr.rel (%p561_p0) target bundleno = 31 (0x1f), region = 36 }
  0x17   : > { %s556_s6 = sshll.u32 %s215_s5, 2 }
  0x18   : > { %s219_s7 = sadd.s32 %s556_s6, %s1004_s30 }
  0x19   : > { %s557_s8 = sshll.u32 %s219_s7, 3 }
  0x1a   : > { %s221_s11 = scalar_lea.vmem %s984_s0, %s557_s8  ;;  %s875_s26 = scalar_lea.vmem %s986_s2, %s557_s8 }
  0x1b   : > { %vm237_vm0 = vcmask 0   ;;  %v768_v0 = vmov -inf   ;;  %v769_v1 = vmov 0.0  }
  0x1c   : > { %238 = vst.msk [vmem:[#allocation2] sm:$0x1] %vm237_vm0, %v768_v0 }
  0x1d   : > { %239 = vst.msk [vmem:[#allocation3] sm:$0x1] %vm237_vm0, %v769_v1 }
  0x1e   : > { %240 = vst [vmem:[#allocation4] sm:$0xf] %v769_v1 }
  0x1f PF: > { %v260_v2 = vld [vmem:[%s985_s1 + $0x78] sm:$0xff]  ;;  %v259_v3 = vld [vmem:[%s985_s1 + $0x70] sm:$0xff]  ;;  %v258_v4 = vld [vmem:[%s985_s1 + $0x68] sm:$0xff]  ;;  %v770_v20 = vmov 0   ;;  %vm285_vm1 = vcmask 7168   ;;  %vm320_vm2 = vcmask 0   ;;  %v323_v60 = vlaneseq }
  0x20   : > { %568 = vmatpush.msra.mxu2 %v260_v2  ;;  %261 = vmatpush.msra.mxu0 %v260_v2  ;;  %v257_v5 = vld [vmem:[%s985_s1 + $0x60] sm:$0xff]  ;;  %v242_v6 = vld [vmem:[%s221_s11 + $0x8] sm:$0xff]  ;;  %v256_v7 = vld [vmem:[%s985_s1 + $0x58] sm:$0xff]  ;;  %vm377_vm5 = vcmask 130048   ;;  %p563_p1 = scmp.ne.s32.totalorder %s750_s15, 1 }
  0x21   : > { %395 = vmatpush.msra.mxu1 %v242_v6  ;;  %v241_v8 = vld [vmem:[%s221_s11] sm:$0xff]  ;;  %v255_v9 = vld [vmem:[%s985_s1 + $0x50] sm:$0xff]  ;;  %v254_v10 = vld [vmem:[%s985_s1 + $0x48] sm:$0xff]  ;;  %661 = vset.pattern.permute.xlu1 %v770_v20  ;;  %v324_v61 = vand.u32 127, %v323_v60 }
  0x22   : > { %569 = vmatpush.msra.mxu2 %v259_v3  ;;  %262 = vmatpush.msra.mxu0 %v259_v3  ;;  %v253_v11 = vld [vmem:[%s985_s1 + $0x40] sm:$0xff]  ;;  %v252_v12 = vld [vmem:[%s985_s1 + $0x38] sm:$0xff]  ;;  %v251_v13 = vld [vmem:[%s985_s1 + $0x30] sm:$0xff] }
  0x23   : > { %396 = vmatpush.msra.mxu1 %v241_v8  ;;  %v250_v14 = vld [vmem:[%s985_s1 + $0x28] sm:$0xff]  ;;  %v249_v15 = vld [vmem:[%s985_s1 + $0x20] sm:$0xff]  ;;  %v248_v16 = vld [vmem:[%s985_s1 + $0x18] sm:$0xff]  ;;  %660 = vset.pattern.permute.xlu0 %v770_v20 }
  0x24   : > { %570 = vmatpush.msra.mxu2 %v258_v4  ;;  %263 = vmatpush.msra.mxu0 %v258_v4  ;;  %v247_v17 = vld [vmem:[%s985_s1 + $0x10] sm:$0xff]  ;;  %v246_v18 = vld [vmem:[%s985_s1 + $0x8] sm:$0xff]  ;;  %v245_v19 = vld [vmem:[%s985_s1] sm:$0xff] }
  0x25   : > { %v244_v21 = vld [vmem:[%s875_s26 + $0x8] sm:$0xff]  ;;  %v243_v22 = vld [vmem:[%s875_s26] sm:$0xff] }
  0x26   : > { %571 = vmatpush.msra.mxu2 %v257_v5  ;;  %264 = vmatpush.msra.mxu0 %v257_v5  ;;  %v284_v33 = vld [vmem:[#allocation2] sm:$0x1]  ;;  %v308_v54 = vld [vmem:[#allocation3] sm:$0x1]  ;;  %v401_v4 = vld [vmem:[#allocation4] sm:$0xf] }
  0x27   : > { %329 = vperm.xlu1 %661, %v244_v21   ;;  %326 = vperm.xlu0 %660, %v243_v22  }
  0x28   : > { %572 = vmatpush.msra.mxu2 %v256_v7  ;;  %265 = vmatpush.msra.mxu0 %v256_v7 }
  0x2a   : > { %573 = vmatpush.msra.mxu2 %v255_v9  ;;  %266 = vmatpush.msra.mxu0 %v255_v9 }
  0x2c   : > { %574 = vmatpush.msra.mxu2 %v254_v10  ;;  %267 = vmatpush.msra.mxu0 %v254_v10 }
  0x2e   : > { %575 = vmatpush.msra.mxu2 %v253_v11  ;;  %268 = vmatpush.msra.mxu0 %v253_v11 }
  0x30   : > { %576 = vmatpush.msra.mxu2 %v252_v12  ;;  %269 = vmatpush.msra.mxu0 %v252_v12 }
  0x32   : > { %577 = vmatpush.msra.mxu2 %v251_v13  ;;  %270 = vmatpush.msra.mxu0 %v251_v13 }
  0x34   : > { %578 = vmatpush.msra.mxu2 %v250_v14  ;;  %271 = vmatpush.msra.mxu0 %v250_v14 }
  0x36   : > { %579 = vmatpush.msra.mxu2 %v249_v15  ;;  %272 = vmatpush.msra.mxu0 %v249_v15 }
  0x38   : > { %580 = vmatpush.msra.mxu2 %v248_v16  ;;  %273 = vmatpush.msra.mxu0 %v248_v16 }
  0x3a   : > { %581 = vmatpush.msra.mxu2 %v247_v17  ;;  %274 = vmatpush.msra.mxu0 %v247_v17 }
  0x3c   : > { %582 = vmatpush.msra.mxu2 %v246_v18  ;;  %275 = vmatpush.msra.mxu0 %v246_v18 }
  0x3e   : > { %583 = vmatpush.msra.mxu2 %v245_v19  ;;  %276 = vmatpush.msra.mxu0 %v245_v19 }
  0x3f   : > { %280 = vmatmul.f32.vlgmr.msra.gmra.mxu2 %v242_v6  ;;  %277 = vmatmul.f32.vlgmr.msra.gmra.mxu0 %v241_v8 }
  0x99   : > { %v327_v59 = vpop.permute.xlu0 %326  ;;  %v330_v62 = vpop.permute.xlu1 %329 }
  0x9a   : > { %vm331_vm3 = vcmp.eq.s32.totalorder %v324_v61, %v327_v59  ;;  %vm332_vm4 = vcmp.eq.s32.totalorder %v324_v61, %v330_v62 }
  0xbc   : > { %v278_v23 = vpop.f32.mrf.mxu0 }
  0xbd   : > { %v286_v24 = vsel %vm285_vm1, %v278_v23, -inf }
  0xc2   : > { %v281_v25 = vpop.f32.mrf.mxu2 }
  0xc3   : > { %v287_v26 = vsel %vm285_vm1, %v281_v25, -inf }
  0xc4   : > { %v288_v27 = vmax.f32 %v286_v24, %v287_v26 }
  0xc6   : > { %v289_v28 = vrot.slane %v288_v27, 4 }
  0xc8   : > { %v290_v29 = vmax.f32 %v288_v27, %v289_v28 }
  0xca   : > { %v291_v30 = vrot.slane %v290_v29, 2 }
  0xcc   : > { %v292_v31 = vmax.f32 %v290_v29, %v291_v30 }
  0xce   : > { %v293_v32 = vrot.slane %v292_v31, 1 }
  0xd0   : > { %v294_v34 = vmax.f32 %v292_v31, %v293_v32 }
  0xd2   : > { %v295_v35 = vmax.f32 %v284_v33, %v294_v34 }
  0xd4   : > { %v300_v36 = vperm.slane %v295_v35, 0  ;;  %322 = vst.msk [vmem:[#allocation2] sm:$0x1] %vm320_vm2, %v295_v35  ;;  %v296_v37 = vsub.f32 %v284_v33, %v295_v35 }
  0xd6   : > { %v302_v38 = vsub.f32 %v278_v23, %v300_v36  ;;  %v303_v39 = vsub.f32 %v281_v25, %v300_v36  ;;  %v297_v42 = vmul.f32 1.442695, %v296_v37 }
  0xd8   : > { %v304_v40 = vmul.f32 1.442695, %v302_v38  ;;  %v306_v41 = vmul.f32 1.442695, %v303_v39 }
  0xda   : > { %662 = vpow2.f32 %v304_v40 }
  0xdb   : > { %664 = vpow2.f32 %v306_v41 }
  0xdc   : > { %666 = vpow2.f32 %v297_v42 }
  0xe0   : > { %v663_v43 = vpop.eup %662 }
  0xe1   : > { %v665_v44 = vpop.eup %664  ;;  %v310_v45 = vsel %vm285_vm1, %v663_v43, 0.0  ;;  %335 = vperm.xlu0 %660, %v663_v43  }
  0xe2   : > { %v311_v46 = vsel %vm285_vm1, %v665_v44, 0.0  ;;  %340 = vperm.xlu1 %661, %v665_v44   ;;  %v667_v48 = vpop.eup %666 }
  0xe3   : > { %v312_v47 = vadd.f32 %v311_v46, %v310_v45  ;;  %v403_v51 = vperm.slane %v667_v48, 0  ;;  %v309_v57 = vmul.f32 %v667_v48, %v308_v54 }
  0xe5   : > { %v313_v49 = vrot.slane %v312_v47, 4 }
  0xe7   : > { %v314_v50 = vadd.f32 %v313_v49, %v312_v47 }
  0xe9   : > { %v315_v52 = vrot.slane %v314_v50, 2  ;;  %405 = vperm.xlu0 %660, %v403_v51  }
  0xeb   : > { %v316_v53 = vadd.f32 %v315_v52, %v314_v50 }
  0xed   : > { %v317_v55 = vrot.slane %v316_v53, 1 }
  0xef   : > { %v318_v56 = vadd.f32 %v317_v55, %v316_v53 }
  0xf1   : > { %v319_v58 = vadd.f32 %v318_v56, %v309_v57 }
  0xf3   : > { %321 = vst.msk [vmem:[#allocation3] sm:$0x1] %vm320_vm2, %v319_v58 }
 0x153   : > { %v336_v63 = vpop.permute.xlu0 %335 }
 0x154   : > { %v343_v0 = vsel %vm331_vm3, %v336_v63, 0.0  ;;  %v341_v1 = vpop.permute.xlu1 %340 }
 0x155   : > { %345 = vxpose.xlu2.b32.start [1/2] (short) (narrow) %v343_v0, 8  ;;  %v344_v2 = vsel %vm332_vm4, %v341_v1, 0.0 }
 0x15b   : > { %v406_v5 = vpop.permute.xlu0 %405 }
 0x15c   : > { %v408_v6 = vmul.f32 %v406_v5, %v401_v4 }
 0x15d   : > { %346 = vxpose.xlu2.b32.end [2/2] (short) (narrow) %v344_v2, 8 }
 0x1ee   : > { %v361_v3 = vpop.trf.xlu2 }
 0x1ef   : > { %562 = vmatmul.msk.f32.vlgmr.msra.gmra.mxu1 %vm377_vm5, %v361_v3 }
 0x26b   : > { %414 = sbr.rel (%p563_p1) target bundleno = 761 (0x2f9), region = 40 }
 0x26c   : > { %v398_v7 = vpop.f32.mrf.mxu1 }
 0x26d   : > { %v409_v8 = vadd.f32 %v408_v6, %v398_v7 }
 0x26f   : > { %410 = vst [vmem:[#allocation4] sm:$0xf] %v409_v8 }
 0x270   : > { %v669_v9 = vld [vmem:[#allocation3] ss:$0 sm:$0xff]  ;;  %v771_v10 = vmov 0  }
 0x271   : > { %668 = vset.pattern.permute.xlu0 %v771_v10 }
 0x272   : > { %420 = vperm.xlu0 %668, %v669_v9  }
 0x276   : > { %v415_v19 = vld [vmem:[#allocation4] sm:$0xf] }
 0x2e4   : > { %v421_v11 = vpop.permute.xlu0 %420 }
 0x2e5   : > { %670 = vrcp.f32 %v421_v11  ;;  %v434_v15 = vand.u32 2147483648, %v421_v11  ;;  %v432_v17 = vand.u32 2147483647, %v421_v11  ;;  %vm428_vm7 = vweird.f32 %v421_v11 }
 0x2e7   : > { %v435_v20 = vor.u32 1.1754944e-38, %v434_v15  ;;  %vm433_vm9 = vcmp.eq.f32.partialorder %v432_v17, 8.507059e+37 }
 0x2eb   : > { %v671_v12 = vpop.eup %670 }
 0x2ec   : > { %v424_v13 = vmul.f32 %v671_v12, %v421_v11  ;;  %vm429_vm6 = vweird.f32 %v671_v12 }
 0x2ed   : > { %vm430_vm8 = vmor %vm428_vm7, %vm429_vm6 }
 0x2ee   : > { %v425_v14 = vsub.f32 1.0, %v424_v13 }
 0x2f0   : > { %v426_v16 = vmul.f32 %v671_v12, %v425_v14 }
 0x2f2   : > { %v427_v18 = vadd.f32 %v671_v12, %v426_v16 }
 0x2f4   : > { %v431_v21 = vsel %vm430_vm8, %v671_v12, %v427_v18 }
 0x2f5   : > { %v436_v22 = vsel %vm433_vm9, %v435_v20, %v431_v21 }
 0x2f6   : > { %v437_v23 = vmul.f32 %v436_v22, %v415_v19 }
 0x2f8   : > { %438 = vst [vmem:[%s212_s27] sm:$0xf] %v437_v23 }
 0x2f9 PF: > { %s565_s15 = sshll.u32 %s754_s16, 2  ;;  %s452_s9 = sshll.u32 %s212_s27, 4  ;;  %s453_s9 = int_to_ptr.vmem [resolvable:$true] %s452_s9 }
 0x2fa   : > { %s450_s8 = scalar_lea.hbm %s987_s3, %s565_s15  ;;  %s440_s11 = scalar_lea.sflag [#allocation6], %s210_s29 }
 0x2fb   : > { %s454_s10 = sshll.u32 %s450_s8, 4  ;;  %s692_s5 = scalar_lea.hbm %s987_s3, 16  ;;  %s455_s10 = int_to_ptr.hbm [resolvable:$true] %s454_s10 }
 0x2fc   : > { %s686_s20 = sshra.s32 %s455_s10, 4  ;;  %s687_s20 = int_to_ptr.hbm [resolvable:$true] %s686_s20 }
 0x2fd   : > { %s688_s21 = scalar_lea.hbm %s687_s20, 4  ;;  %p693_p6 = scmp.lt.s32.totalorder %s687_s20, %s987_s3 }
 0x2fe   : > { %p689_p2 = scmp.ne.s32.totalorder %s687_s20, %s688_s21  ;;  %p694_p7 = scmp.lt.s32.totalorder %s692_s5, %s688_s21 }
 0x300   : > { %p690_p4 = pnand %p689_p2, %p841_p3  ;;  %p695_p8 = por %p694_p7, %p693_p6 }
 0x302   : > { %p691_p5 = pneg %p690_p4 }
 0x304   : > { %p696_p10 = pnand %p695_p8, %p691_p5 }
 0x306   : > { %699 = shalt.err (!%p696_p10)
}
 0x307   : > { %584 = dma.vmem_to_hbm [thread:$0]  (%p841_p3), %s453_s9, 64, %s455_s10, %s440_s11  }
 0x308 PF: > { %p590_p11 = scmp.ge.s32.totalorder %s766_s19, 2  ;;  %s466_s29 = sand.u32 1, %s738_s12  }
 0x309   : > { %s467_s4 = scalar_lea.sflag [#allocation6], %s466_s29 }
 0x30a   : > { %p587_p12 = pnand %p590_p11, %p851_p9 }
 0x30c   : > { %p588_p13 = pneg %p587_p12 }
 0x30e   : > { %733 = dma.done.wait (%p588_p13), %s467_s4, 64  }
 0x30f   : > { %735 = vsyncadd (%p588_p13), %s467_s4, 4294967232  ;;  %s16_s19 = sadd.s32 1, %s766_s19   ;;  %s990_s12 = smov %s742_s13 }
 0x310   : > { %p13_p0 = scmp.ge.s32.totalorder %s16_s19, 10   ;;  %s991_s13 = smov %s746_s14 }
 0x311   : > { %s992_s14 = smov %s859_s28  ;;  %s993_s15 = smov %s758_s17 }
 0x312   : > { %s994_s16 = smov %s762_s18  ;;  %s995_s17 = smov %s998_s22 }
 0x313   : > { %s996_s18 = smov %s1002_s23  ;;  %15 = sbr.rel (!%p13_p0) target bundleno = 5 (0x5), region = 78 }
 0x318   :  { %473 = vsyncpa [#allocation6], 1 }
 0x319   :  { %475 = vsyncpa [#allocation6 + $0x1], 1 }

</bundles_post_ra>
